<compile_context>
chip_gen: v5e
topology: v5e:2x2
jax: 0.10.0
libtpu: 0.0.40
codegen_flags: <defaults>
</compile_context>

<pallas_src>
import jax
import jax.numpy as jnp
from jax.experimental import pallas as pl
from jax.experimental.pallas import tpu as pltpu


def _round_up(v, m):
    return ((v + m - 1) // m) * m


def _deletion_kernel(any_ref, x_ref, w_ref, m_ref, o_ref):
    """any_ref: SMEM per-tile flag; x/w/m/o: VMEM tiles."""
    x = x_ref[...]                                     # (tile_n, dim_p)
    tile_has_masked = any_ref[pl.program_id(0)] != 0

    @pl.when(tile_has_masked)
    def _():
        # MXU matmul with f32 accumulation regardless of input dtype.
        y = jnp.dot(x, w_ref[...], preferred_element_type=jnp.float32)
        keep = m_ref[...] != 0                         # (tile_n, 1) bool
        o_ref[...] = jnp.where(keep, y, x.astype(jnp.float32)).astype(o_ref.dtype)

    @pl.when(jnp.logical_not(tile_has_masked))
    def _():
        # No masked row in this tile: pure pass-through, skip the MXU work.
        o_ref[...] = x.astype(o_ref.dtype)


def deletion_layer_kg(x, deletion_weight, mask=None, *, tile_n=256,
                      use_bf16_matmul=False):
    """Pallas equivalent of DeletionLayerKG.forward.

    x:               [N, dim]
    deletion_weight: [dim, dim]
    mask:            [N] bool (or None -> return x unchanged)
    """
    if mask is None:
        return x

    n, dim = x.shape
    assert deletion_weight.shape == (dim, dim)
    out_dtype = x.dtype
    compute_dtype = jnp.bfloat16 if use_bf16_matmul else x.dtype
    in_itm = jnp.dtype(compute_dtype).itemsize
    out_itm = jnp.dtype(out_dtype).itemsize

    # ---- tile plan ---------------------------------------------------------
    dim_p = _round_up(dim, 128)                      # lane-dense last dim
    tile = max(16, min(_round_up(tile_n, 16), _round_up(n, 16)))

    def _vmem_est(t):
        return (2 * t * dim_p * in_itm              # x, double-buffered
                + 2 * t * dim_p * out_itm           # out, double-buffered
                + 2 * dim_p * dim_p * in_itm        # W (worst case: 2 buffers)
                + 2 * t * 128 * 4)                  # mask column (lane-padded)

    vmem_budget = 48 * 1024 * 1024                  # fits v5e/v6e/v7x physical VMEM
    while _vmem_est(tile) > vmem_budget and tile > 16:
        tile = max(16, tile // 2)

    n_p = _round_up(n, tile)
    num_tiles = n_p // tile
    grid = (num_tiles,)

    # ---- pad inputs (zeros are inert: padded rows have mask=0) -------------
    x_p = jnp.zeros((n_p, dim_p), compute_dtype).at[:n, :dim].set(
        x.astype(compute_dtype))
    w_p = jnp.zeros((dim_p, dim_p), compute_dtype).at[:dim, :dim].set(
        deletion_weight.astype(compute_dtype))
    mask_i32 = mask.astype(jnp.int32)
    m_p = jnp.zeros((n_p, 1), jnp.int32).at[:n, 0].set(mask_i32)
    # Per-tile "any masked row" flag -> SMEM scalar prefetch.
    tile_any = jnp.max(m_p[:, 0].reshape(num_tiles, tile), axis=1).astype(jnp.int32)

    vmem_limit = int(min(96 * 1024 * 1024,
                         max(32 * 1024 * 1024, _vmem_est(tile) * 5 // 4)))
    cost = pl.CostEstimate(
        flops=2 * n_p * dim_p * dim_p,
        transcendentals=0,
        bytes_accessed=(n_p * dim_p * (in_itm + out_itm)
                        + dim_p * dim_p * in_itm + n_p * 4),
    )

    out_p = pl.pallas_call(
        _deletion_kernel,
        out_shape=jax.ShapeDtypeStruct((n_p, dim_p), out_dtype),
        grid_spec=pltpu.PrefetchScalarGridSpec(
            num_scalar_prefetch=1,                   # tile_any -> SMEM
            grid=grid,
            in_specs=[
                pl.BlockSpec((tile, dim_p), lambda i, a: (i, 0)),    # x rows
                pl.BlockSpec((dim_p, dim_p), lambda i, a: (0, 0)),   # weight (grid-invariant)
                pl.BlockSpec((tile, 1), lambda i, a: (i, 0)),        # mask col
            ],
            out_specs=pl.BlockSpec((tile, dim_p), lambda i, a: (i, 0)),
        ),
        compiler_params=pltpu.CompilerParams(
            dimension_semantics=("parallel",),
            vmem_limit_bytes=vmem_limit,
        ),
        cost_estimate=cost,
    )(tile_any, x_p, w_p, m_p)

    return out_p[:n, :dim]


if __name__ == "__main__":
    key = jax.random.PRNGKey(0)
    N, DIM = 16, 32

    kx, km = jax.random.split(key)
    x = jax.random.normal(kx, (N, DIM), dtype=jnp.float32)
    mask = jax.random.bernoulli(km, p=0.5, shape=(N,))

    # Deterministic parameter init, matching nn.Parameter(torch.ones(dim, dim) / 1000)
    deletion_weight = jnp.ones((DIM, DIM), dtype=jnp.float32) / 1000.0

    # Pure-JAX reference.
    y_ref = jnp.where(mask[:, None], x @ deletion_weight, x)

    # f32 path (exact).
    out = deletion_layer_kg(x, deletion_weight, mask)
    out = jax.block_until_ready(out)
    assert out.shape == (N, DIM)
    assert jnp.allclose(out, y_ref, atol=1e-5, rtol=1e-5)

    # mask=None path returns x unchanged (matches the module).
    assert deletion_layer_kg(x, deletion_weight, None) is x

    print("KERNEL_OK")
</pallas_src>

<mosaic_0001>
module attributes {stable_mosaic.version = 11 : i64} {
  func.func @_deletion_kernel(%arg0: i32, %arg1: memref<1xi32, #tpu.memory_space<smem>>, %arg2: memref<16x128xf32, #tpu.memory_space<vmem>>, %arg3: memref<128x128xf32, #tpu.memory_space<vmem>>, %arg4: memref<16x1xi32, #tpu.memory_space<vmem>>, %arg5: memref<16x128xf32, #tpu.memory_space<vmem>>) attributes {dimension_semantics = [#tpu.dimension_semantics<parallel>], iteration_bounds = array<i64: 1>, scalar_prefetch = 1 : i64, scratch_operands = 0 : i64, tpu.core_type = #tpu.core_type<tc>, window_params = [{transform_indices = @transform_0, window_bounds = array<i64: 16, 128>}, {pipeline_mode = #tpu.pipeline_mode<synchronous>, transform_indices = @transform_1, window_bounds = array<i64: 128, 128>}, {transform_indices = @transform_2, window_bounds = array<i64: 16, 1>}, {transform_indices = @transform_3, window_bounds = array<i64: 16, 128>}]} {
    %c0 = arith.constant 0 : index
    %c0_0 = arith.constant 0 : index
    %0 = vector.load %arg2[%c0, %c0_0] : memref<16x128xf32, #tpu.memory_space<vmem>>, vector<16x128xf32>
    %1 = arith.index_cast %arg0 : i32 to index
    %2 = memref.load %arg1[%1] : memref<1xi32, #tpu.memory_space<smem>>
    %c0_i32 = arith.constant 0 : i32
    %3 = arith.cmpi ne, %2, %c0_i32 : i32
    %4 = arith.extui %3 : i1 to i32
    %c0_i32_1 = arith.constant 0 : i32
    %5 = arith.cmpi ne, %4, %c0_i32_1 : i32
    scf.if %5 {
      %c0_3 = arith.constant 0 : index
      %c0_4 = arith.constant 0 : index
      %9 = vector.load %arg3[%c0_3, %c0_4] : memref<128x128xf32, #tpu.memory_space<vmem>>, vector<128x128xf32>
      %cst = arith.constant dense<0.000000e+00> : vector<16x128xf32>
      %10 = tpu.matmul %0, %9, %cst {dimension_numbers = #tpu.dot_dimension_numbers<[1], [0], [0], [1], [0, 0, 1, 1], [], []>} : vector<16x128xf32>, vector<128x128xf32>, vector<16x128xf32> -> vector<16x128xf32>
      %c0_5 = arith.constant 0 : index
      %c0_6 = arith.constant 0 : index
      %11 = vector.load %arg4[%c0_5, %c0_6] : memref<16x1xi32, #tpu.memory_space<vmem>>, vector<16x1xi32>
      %c0_i32_7 = arith.constant 0 : i32
      %12 = vector.broadcast %c0_i32_7 : i32 to vector<16x1xi32>
      %13 = arith.cmpi ne, %11, %12 : vector<16x1xi32>
      %14 = vector.shape_cast %13 : vector<16x1xi1> to vector<16x1xi1>
      %15 = vector.broadcast %14 : vector<16x1xi1> to vector<16x128xi1>
      %16 = arith.select %15, %10, %0 : vector<16x128xi1>, vector<16x128xf32>
      %c0_8 = arith.constant 0 : index
      %c0_9 = arith.constant 0 : index
      %17 = vector.load %arg5[%c0_8, %c0_9] : memref<16x128xf32, #tpu.memory_space<vmem>>, vector<16x128xf32>
      tpu.vector_store %arg5[%c0_8, %c0_9], %16 {strides = array<i32>} : memref<16x128xf32, #tpu.memory_space<vmem>>, vector<16x128xf32>,
    } else {
    }
    %true = arith.constant true
    %6 = arith.xori %3, %true : i1
    %7 = arith.extui %6 : i1 to i32
    %c0_i32_2 = arith.constant 0 : i32
    %8 = arith.cmpi ne, %7, %c0_i32_2 : i32
    scf.if %8 {
      %c0_3 = arith.constant 0 : index
      %c0_4 = arith.constant 0 : index
      %9 = vector.load %arg5[%c0_3, %c0_4] : memref<16x128xf32, #tpu.memory_space<vmem>>, vector<16x128xf32>
      tpu.vector_store %arg5[%c0_3, %c0_4], %0 {strides = array<i32>} : memref<16x128xf32, #tpu.memory_space<vmem>>, vector<16x128xf32>,
    } else {
    }
    return
  }
  func.func @transform_0(%arg0: i32, %arg1: memref<1xi32, #tpu.memory_space<smem>>) -> (i32, i32) {
    %c0_i32 = arith.constant 0 : i32
    %c0_i32_0 = arith.constant 0 : i32
    return %arg0, %c0_i32 : i32, i32
  }
  func.func @transform_1(%arg0: i32, %arg1: memref<1xi32, #tpu.memory_space<smem>>) -> (i32, i32) {
    %c0_i32 = arith.constant 0 : i32
    %c0_i32_0 = arith.constant 0 : i32
    %c0_i32_1 = arith.constant 0 : i32
    return %c0_i32, %c0_i32_0 : i32, i32
  }
  func.func @transform_2(%arg0: i32, %arg1: memref<1xi32, #tpu.memory_space<smem>>) -> (i32, i32) {
    %c0_i32 = arith.constant 0 : i32
    %c0_i32_0 = arith.constant 0 : i32
    return %arg0, %c0_i32 : i32, i32
  }
  func.func @transform_3(%arg0: i32, %arg1: memref<1xi32, #tpu.memory_space<smem>>) -> (i32, i32) {
    %c0_i32 = arith.constant 0 : i32
    %c0_i32_0 = arith.constant 0 : i32
    return %arg0, %c0_i32 : i32, i32
  }
}

</mosaic_0001>

<bundles_post_ra>
// kernel: tpu_custom_call.1
= control target key start
LH: loop header
LB: loop body
LE: loop exit
PB: predicated region body
PF: predicated region fallthrough
CT: control target
= control target key end

     0   :  { %10 = vsyncpa [#allocation5], 0  ;;  %s268_s0 = inlined_call_operand.<no memory space> [shape: s32[1], index: 0, kind: input, shape index: {}]   ;;  %s269_s1 = inlined_call_operand.vmem [shape: f32[16,128], index: 1, kind: input, shape index: {}]   ;;  %s270_s2 = inlined_call_operand.hbm [shape: f32[128,128], index: 2, kind: input, shape index: {}]   ;;  %s271_s3 = inlined_call_operand.vmem [shape: s32[16,1], index: 3, kind: input, shape index: {}]   ;;  %s272_s4 = inlined_call_operand.hbm [shape: f32[16,128], index: 4, kind: output, shape index: {}]  }
   0x1   :  { %11 = vsyncpa [#allocation6], 0  ;;  %s18_s17 = sshll.u32 %s270_s2, 4  ;;  %s198_s18 = smov [#allocation4]   ;;  %s19_s17 = int_to_ptr.hbm [resolvable:$true] %s18_s17 }
   0x2   :  { %s20_s19 = sshll.u32 %s198_s18, 4  ;;  %s199_s20 = smov 128   ;;  %s21_s19 = int_to_ptr.vmem [resolvable:$true] %s20_s19 }
   0x3   :  { %s200_s21 = smov 8  }
   0x4   :  { %26 = dma.hbm_to_vmem [thread:$0]  %s19_s17, 2048, %s21_s19, [#allocation5], %s199_s20, %s199_s20, %s200_s21  }
   0x5   :  { %194 = dma.done.wait [#allocation5], 2048  }
   0x6   :  { %195 = vsyncadd [#allocation5], 4294965248  ;;  %v237_v0 = vld [vmem:[%s269_s1] sm:$0xff]  ;;  %v242_v1 = vld [vmem:[%s269_s1 + $0x8] sm:$0xff]  ;;  %p122_p0 = scmp.eq.s32.totalorder %s268_s0, 0 }
   0x8   :  { %39 = sbr.rel (%p122_p0) target bundleno = 174 (0xae), region = 21 }
   0xd   :  { %v55_v2 = vld [vmem:[#allocation4 + $0x78] sm:$0xff]  ;;  %v54_v3 = vld [vmem:[#allocation4 + $0x70] sm:$0xff]  ;;  %v53_v4 = vld [vmem:[#allocation4 + $0x68] sm:$0xff]  ;;  %v201_v5 = vmov 0  }
   0xe   :  { %56 = vmatpush.msra.mxu0 %v55_v2  ;;  %124 = vmatpush.msra.mxu1 %v55_v2  ;;  %v52_v6 = vld [vmem:[#allocation4 + $0x60] sm:$0xff]  ;;  %v51_v8 = vld [vmem:[#allocation4 + $0x58] sm:$0xff]  ;;  %v80_v10 = vld [vmem:[%s271_s3 + $0x8] sm:$0xff] }
   0xf   :  { %145 = vset.pattern.permute.xlu0 %v201_v5  ;;  %v79_v7 = vld [vmem:[%s271_s3] sm:$0xff]  ;;  %v50_v11 = vld [vmem:[#allocation4 + $0x50] sm:$0xff]  ;;  %v49_v12 = vld [vmem:[#allocation4 + $0x48] sm:$0xff]  ;;  %vm82_vm1 = vcmp.ne.s32.totalorder %v80_v10, 0 }
  0x10   :  { %57 = vmatpush.msra.mxu0 %v54_v3  ;;  %125 = vmatpush.msra.mxu1 %v54_v3  ;;  %vm81_vm0 = vcmp.ne.s32.totalorder %v79_v7, 0  ;;  %v48_v13 = vld [vmem:[#allocation4 + $0x40] sm:$0xff]  ;;  %v84_v14 = vsel %vm82_vm1, 1, %v201_v5  ;;  %v47_v15 = vld [vmem:[#allocation4 + $0x38] sm:$0xff]  ;;  %v46_v16 = vld [vmem:[#allocation4 + $0x30] sm:$0xff] }
  0x11   :  { %v83_v9 = vsel %vm81_vm0, 1, %v201_v5  ;;  %v45_v17 = vld [vmem:[#allocation4 + $0x28] sm:$0xff]  ;;  %v44_v18 = vld [vmem:[#allocation4 + $0x20] sm:$0xff]  ;;  %v43_v19 = vld [vmem:[#allocation4 + $0x18] sm:$0xff] }
  0x12   :  { %58 = vmatpush.msra.mxu0 %v53_v4  ;;  %126 = vmatpush.msra.mxu1 %v53_v4  ;;  %v42_v20 = vld [vmem:[#allocation4 + $0x10] sm:$0xff]  ;;  %v41_v21 = vld [vmem:[#allocation4 + $0x8] sm:$0xff]  ;;  %v40_v22 = vld [vmem:[#allocation4] sm:$0xff] }
  0x13   :  { %86 = vperm.xlu0 %145, %v83_v9  }
  0x14   :  { %59 = vmatpush.msra.mxu0 %v52_v6  ;;  %127 = vmatpush.msra.mxu1 %v52_v6 }
  0x16   :  { %60 = vmatpush.msra.mxu0 %v51_v8  ;;  %128 = vmatpush.msra.mxu1 %v51_v8 }
  0x18   :  { %61 = vmatpush.msra.mxu0 %v50_v11  ;;  %129 = vmatpush.msra.mxu1 %v50_v11 }
  0x1a   :  { %62 = vmatpush.msra.mxu0 %v49_v12  ;;  %130 = vmatpush.msra.mxu1 %v49_v12 }
  0x1b   :  { %89 = vperm.xlu0 %145, %v84_v14  }
  0x1c   :  { %63 = vmatpush.msra.mxu0 %v48_v13  ;;  %131 = vmatpush.msra.mxu1 %v48_v13 }
  0x1e   :  { %64 = vmatpush.msra.mxu0 %v47_v15  ;;  %132 = vmatpush.msra.mxu1 %v47_v15 }
  0x20   :  { %65 = vmatpush.msra.mxu0 %v46_v16  ;;  %133 = vmatpush.msra.mxu1 %v46_v16 }
  0x22   :  { %66 = vmatpush.msra.mxu0 %v45_v17  ;;  %134 = vmatpush.msra.mxu1 %v45_v17 }
  0x24   :  { %67 = vmatpush.msra.mxu0 %v44_v18  ;;  %135 = vmatpush.msra.mxu1 %v44_v18 }
  0x26   :  { %68 = vmatpush.msra.mxu0 %v43_v19  ;;  %136 = vmatpush.msra.mxu1 %v43_v19 }
  0x28   :  { %69 = vmatpush.msra.mxu0 %v42_v20  ;;  %137 = vmatpush.msra.mxu1 %v42_v20 }
  0x2a   :  { %70 = vmatpush.msra.mxu0 %v41_v21  ;;  %138 = vmatpush.msra.mxu1 %v41_v21 }
  0x2c   :  { %71 = vmatpush.msra.mxu0 %v40_v22  ;;  %139 = vmatpush.msra.mxu1 %v40_v22 }
  0x2d   :  { %72 = vmatmul.f32.vlgmr.msra.gmra.mxu0 %v237_v0  ;;  %75 = vmatmul.f32.vlgmr.msra.gmra.mxu1 %v242_v1 }
  0x85   :  { %v87_v23 = vpop.permute.xlu0 %86 }
  0x86   :  { %vm91_vm2 = vcmp.eq.s32.totalorder %v87_v23, 1 }
  0x8d   :  { %v90_v24 = vpop.permute.xlu0 %89 }
  0x8e   :  { %vm92_vm3 = vcmp.eq.s32.totalorder %v90_v24, 1 }
  0xaa   :  { %v73_v25 = vpop.f32.mrf.mxu0  ;;  %v76_v26 = vpop.f32.mrf.mxu1 }
  0xab   :  { %v93_v27 = vsel %vm91_vm2, %v73_v25, %v237_v0  ;;  %v94_v28 = vsel %vm92_vm3, %v76_v26, %v242_v1 }
  0xac   :  { %95 = vst [vmem:[#allocation7] sm:$0xff] %v93_v27 }
  0xad   :  { %96 = vst [vmem:[#allocation7 + $0x8] sm:$0xff] %v94_v28 }
  0xae PF:  { %p123_p1 = scmp.ne.s32.totalorder %s268_s0, 0 }
  0xb0   :  { %100 = sbr.rel (%p123_p1) target bundleno = 183 (0xb7), region = 25 }
  0xb5   :  { %101 = vst [vmem:[#allocation7] sm:$0xff] %v237_v0 }
  0xb6   :  { %102 = vst [vmem:[#allocation7 + $0x8] sm:$0xff] %v242_v1 }
  0xb7 PF:  { %s109_s7 = sshll.u32 %s272_s4, 4  ;;  %s202_s8 = smov [#allocation7]   ;;  %s110_s7 = int_to_ptr.hbm [resolvable:$true] %s109_s7 }
  0xb8   :  { %s107_s9 = sshll.u32 %s202_s8, 4  ;;  %s108_s9 = int_to_ptr.vmem [resolvable:$true] %s107_s9 }
  0xb9   :  { %115 = dma.vmem_to_hbm [thread:$0]  %s108_s9, 256, %s110_s7, [#allocation6], %s199_s20, %s199_s20, %s200_s21  }
  0xba   :  { %196 = dma.done.wait [#allocation6], 256  }
  0xbb   :  { %197 = vsyncadd [#allocation6], 4294967040 }
  0xbc   :  { %120 = vsyncpa [#allocation5], 1 }
  0xbd   :  { %121 = vsyncpa [#allocation6], 1 }

</bundles_post_ra>
